<compile_context>
chip_gen: v6e
topology: v6e:2x2x1
jax: 0.10.0
libtpu: 0.0.40
codegen_flags: <defaults>
</compile_context>

<pallas_src>
import jax
import jax.numpy as jnp
from jax.experimental import pallas as pl
from jax.experimental.pallas import tpu as pltpu


def _round_up(x, m):
    return ((x + m - 1) // m) * m


def _round_down(x, m):
    return (x // m) * m


def _sublane_multiple(dtype):
    itemsize = jnp.dtype(dtype).itemsize
    return {4: 8, 2: 16, 1: 32}.get(itemsize, 8)


def _vmem_budgets(vmem_block_budget, vmem_limit_bytes):
    """Generation-aware VMEM sizing (128 MiB on v5e/v6e, 64 MiB on v7x)."""
    cap = None
    try:
        if hasattr(pltpu, "get_tpu_info"):
            cap = getattr(pltpu.get_tpu_info(), "vmem_capacity_bytes", None)
    except Exception:
        cap = None
    if cap is None:
        cap = 64 * 1024 * 1024  # conservative fallback: assume v7x-sized VMEM
    if cap >= 100 * 1024 * 1024:        # v5e / v6e: 128 MiB physical VMEM
        blk, lim = 96 * 1024 * 1024, 110 * 1024 * 1024
    else:                               # v7x: 64 MiB physical VMEM
        blk, lim = 40 * 1024 * 1024, 56 * 1024 * 1024
    if vmem_block_budget is None:
        vmem_block_budget = blk
    if vmem_limit_bytes is None:
        vmem_limit_bytes = lim
    return vmem_block_budget, vmem_limit_bytes, cap


def _lora_kernel(x_ref, a_ref, b_ref, o_ref, xa_ref):
    """One (row-tile i, out-tile j) grid step of y = (x @ A) @ B."""
    # Hoist x @ A out of the out-tile (j) loop: compute once per row tile into
    # VMEM scratch and reuse it for all j (j axis is "arbitrary" / sequential).
    @pl.when(pl.program_id(1) == 0)
    def _():
        xa_ref[...] = jnp.dot(x_ref[...], a_ref[...],
                              preferred_element_type=jnp.float32)

    xa = xa_ref[...].astype(b_ref.dtype)
    o_ref[...] = jnp.dot(xa, b_ref[...],
                         preferred_element_type=jnp.float32).astype(o_ref.dtype)


def lora_forward(x, lora_A, lora_B, scaling=1.0, *,
                 compute_dtype=None,       # e.g. jnp.bfloat16: halves x HBM read
                 out_dtype=None,           # default x.dtype; bf16 halves y write
                 target_tm=512,            # preferred row tile (rows of x)
                 target_tn=512,            # out tile used only when out is tiled
                 vmem_block_budget=None,   # per-step block budget (None: per-gen)
                 vmem_limit_bytes=None):   # scoped VMEM limit (None: per-gen)
    """y = scaling * (x @ lora_A @ lora_B); x: (..., in) -> (..., out).

    With compute_dtype=jnp.bfloat16 the x@A intermediate is rounded to bf16
    before the second matmul (per-matmul f32 accumulation, not end-to-end).
    """
    in_features, rank = lora_A.shape
    rank_b, out_features = lora_B.shape
    assert rank == rank_b, "lora_A / lora_B rank mismatch"
    orig_shape = x.shape
    assert orig_shape[-1] == in_features
    if out_dtype is None:
        out_dtype = x.dtype

    # Fold scaling into B once (tiny rank x out multiply on the XLA side).
    b_scaled = lora_B * jnp.asarray(scaling, dtype=lora_B.dtype)

    if compute_dtype is not None:
        x = x.astype(compute_dtype)
        lora_A = lora_A.astype(compute_dtype)
        b_scaled = b_scaled.astype(compute_dtype)
    else:
        lora_A = lora_A.astype(x.dtype)
        b_scaled = b_scaled.astype(x.dtype)

    dsize = jnp.dtype(x.dtype).itemsize
    out_dsize = jnp.dtype(out_dtype).itemsize

    x2d = x.reshape(-1, in_features)
    M = x2d.shape[0]

    vmem_block_budget, vmem_limit_bytes, vmem_cap = _vmem_budgets(
        vmem_block_budget, vmem_limit_bytes)

    # tm must satisfy the sublane pack of both the compute dtype (x tile) and
    # the output dtype (y tile): 8 for f32, 16 for bf16, 32 for 8-bit.
    sub_m = max(_sublane_multiple(x.dtype), _sublane_multiple(out_dtype))

    def _block_bytes(tm_, tn_):
        # Double-buffered pipeline blocks (x tile, A, B tile, y tile) plus the
        # single-buffered f32 x@A scratch.
        return (2 * (dsize * (tm_ * in_features + in_features * rank + rank * tn_)
                     + out_dsize * tm_ * tn_)
                + 4 * tm_ * rank)

    # ---- out_features tiling: prefer B fully resident (grid_n == 1) ---------
    out_pad = _round_up(out_features, 128)            # lane-dense output
    tm_floor = _round_up(min(256, M), sub_m)          # smallest row tile we accept
    if _block_bytes(tm_floor, out_pad) <= vmem_block_budget:
        tn = out_pad
    else:
        tn = max(128, _round_down(min(target_tn, out_pad), 128))
        while tn > 128 and _block_bytes(tm_floor, tn) > vmem_block_budget:
            tn = max(128, _round_down(tn // 2, 128))
        # Correctness: tn must divide the padded output width so every output
        # column is written exactly once.
        out_pad = _round_up(out_features, tn)
    grid_n = out_pad // tn

    if out_pad != out_features:
        b_scaled = jnp.pad(b_scaled, ((0, 0), (0, out_pad - out_features)))

    # ---- row tile: largest that fits VMEM, then minimize padded-row waste ----
    tm = _round_up(min(target_tm, M), sub_m)
    while tm > sub_m and _block_bytes(tm, tn) > vmem_block_budget:
        tm = max(sub_m, _round_down(tm // 2, sub_m))
    # Padded rows are pure wasted HBM read+write on a bandwidth-bound kernel:
    # search sub_m-aligned tiles in [tm/2, tm] for the least total rows
    # processed (ties go to the larger tile -> fewer grid steps).
    best_tm, best_rows = tm, pl.cdiv(M, tm) * tm
    cand = tm - sub_m
    while cand >= max(sub_m, tm // 2):
        rows = pl.cdiv(M, cand) * cand
        if rows < best_rows:
            best_tm, best_rows = cand, rows
        cand -= sub_m
    tm = best_tm

    M_pad = pl.cdiv(M, tm) * tm
    if M_pad != M:
        x2d = jnp.pad(x2d, ((0, M_pad - M), (0, 0)))
    grid_m = M_pad // tm

    # ---- specs --------------------------------------------------------------
    def _spec(shape, index_map, buffers=None):
        if buffers is not None and buffers > 2 and hasattr(pl, "Buffered"):
            try:
                return pl.BlockSpec(shape, index_map,
                                    pipeline_mode=pl.Buffered(buffers))
            except TypeError:
                pass  # older API without pipeline_mode: default double-buffer
        return pl.BlockSpec(shape, index_map)

    # On v7x the 64 MiB VMEM can force small tiles whose DMAs are short next to
    # the fixed per-step overhead; keep more x DMAs in flight in that regime.
    deep_buffers = None
    if (vmem_cap < 100 * 1024 * 1024
            and grid_m * grid_n >= 64
            and dsize * tm * in_features < 2 * 1024 * 1024):
        deep_buffers = 3

    cost = pl.CostEstimate(
        flops=2 * M_pad * in_features * rank          # x @ A, once per row tile
              + 2 * M_pad * rank * out_pad,           # (x @ A) @ B
        transcendentals=0,
        bytes_accessed=dsize * (M_pad * in_features + in_features * rank
                                + rank * out_pad)
                       + out_dsize * M_pad * out_pad,
    )

    out2d = pl.pallas_call(
        _lora_kernel,
        out_shape=jax.ShapeDtypeStruct((M_pad, out_pad), out_dtype),
        grid_spec=pltpu.PrefetchScalarGridSpec(
            num_scalar_prefetch=0,
            # j (out tiles) innermost: consecutive steps share the same x block
            # (its DMA is elided) and reuse the hoisted x@A scratch.
            grid=(grid_m, grid_n),
            in_specs=[
                _spec((tm, in_features), lambda i, j: (i, 0), deep_buffers),  # x
                pl.BlockSpec((in_features, rank), lambda i, j: (0, 0)),       # A
                pl.BlockSpec((rank, tn), lambda i, j: (0, j)),                # B
            ],
            out_specs=pl.BlockSpec((tm, tn), lambda i, j: (i, j)),
            scratch_shapes=[pltpu.VMEM((tm, rank), jnp.float32)],             # x@A
        ),
        compiler_params=pltpu.CompilerParams(
            # Row tiles parallel (v7x megacore splits disjoint x rows); out-tile
            # axis arbitrary/sequential so the x@A scratch pattern is valid.
            dimension_semantics=("parallel", "arbitrary"),
            vmem_limit_bytes=vmem_limit_bytes,
        ),
        cost_estimate=cost,
    )(x2d, lora_A, b_scaled)

    out2d = out2d[:M, :out_features]
    return out2d.reshape(*orig_shape[:-1], out_features)


if __name__ == "__main__":
    # Small shapes consistent with the module's forward (feature-last input).
    batch, seq, in_features, out_features, rank = 2, 8, 32, 32, 4

    key = jax.random.PRNGKey(0)
    kx, ka, kb = jax.random.split(key, 3)

    x = jax.random.normal(kx, (batch, seq, in_features), dtype=jnp.float32)
    # Deterministic parameter init mirroring torch.randn(...) / rank
    lora_A = jax.random.normal(ka, (in_features, rank), dtype=jnp.float32) / rank
    lora_B = jax.random.normal(kb, (rank, out_features), dtype=jnp.float32) / rank
    scaling = 1.0

    hi = jax.lax.Precision.HIGHEST
    y_ref = scaling * jnp.dot(jnp.dot(x, lora_A, precision=hi), lora_B, precision=hi)

    # 1) f32 path (default)
    y = lora_forward(x, lora_A, lora_B, scaling)
    jax.block_until_ready(y)
    assert y.shape == (batch, seq, out_features)
    assert jnp.allclose(y, y_ref, atol=2e-2, rtol=2e-2)

    # 2) bf16 compute path (MXU-native, halves x HBM read); f32 writeback,
    #    plus the optional bf16 writeback variant.
    y_bf16 = lora_forward(x, lora_A, lora_B, scaling, compute_dtype=jnp.bfloat16)
    jax.block_until_ready(y_bf16)
    assert y_bf16.shape == (batch, seq, out_features)
    assert jnp.allclose(y_bf16, y_ref, atol=1e-1, rtol=1e-1)

    y_bf16o = lora_forward(x, lora_A, lora_B, scaling,
                           compute_dtype=jnp.bfloat16, out_dtype=jnp.bfloat16)
    jax.block_until_ready(y_bf16o)
    assert y_bf16o.dtype == jnp.bfloat16
    assert jnp.allclose(y_bf16o.astype(jnp.float32), y_ref, atol=1e-1, rtol=1e-1)

    # 3) Odd shapes with a small VMEM budget: exercises out_features tiling
    #    (out_pad a multiple of tn), row-pad minimization, and the x@A hoist
    #    across multiple out tiles.
    M2, in2, out2, r2 = 130, 256, 700, 8
    x2 = jax.random.normal(kx, (M2, in2), dtype=jnp.float32)
    A2 = jax.random.normal(ka, (in2, r2), dtype=jnp.float32) / r2
    B2 = jax.random.normal(kb, (r2, out2), dtype=jnp.float32) / r2
    y2 = lora_forward(x2, A2, B2, 1.0, target_tm=64, target_tn=256,
                      vmem_block_budget=512 * 1024)
    jax.block_until_ready(y2)
    y2_ref = jnp.dot(jnp.dot(x2, A2, precision=hi), B2, precision=hi)
    assert y2.shape == (M2, out2)
    assert jnp.allclose(y2, y2_ref, atol=2e-2, rtol=2e-2)

    print("KERNEL_OK")
</pallas_src>

<mosaic_0001>
module attributes {stable_mosaic.version = 11 : i64} {
  func.func @_lora_kernel(%arg0: i32, %arg1: i32, %arg2: memref<16x32xf32, #tpu.memory_space<vmem>>, %arg3: memref<32x4xf32, #tpu.memory_space<vmem>>, %arg4: memref<4x128xf32, #tpu.memory_space<vmem>>, %arg5: memref<16x128xf32, #tpu.memory_space<vmem>>, %arg6: memref<16x4xf32, #tpu.memory_space<vmem>>) attributes {dimension_semantics = [#tpu.dimension_semantics<parallel>, #tpu.dimension_semantics<arbitrary>], iteration_bounds = array<i64: 1, 1>, scalar_prefetch = 0 : i64, scratch_operands = 1 : i64, tpu.core_type = #tpu.core_type<tc>, window_params = [{transform_indices = @transform_0, window_bounds = array<i64: 16, 32>}, {pipeline_mode = #tpu.pipeline_mode<synchronous>, transform_indices = @transform_1, window_bounds = array<i64: 32, 4>}, {transform_indices = @transform_2, window_bounds = array<i64: 4, 128>}, {transform_indices = @transform_3, window_bounds = array<i64: 16, 128>}]} {
    %c0_i32 = arith.constant 0 : i32
    %0 = arith.cmpi eq, %arg1, %c0_i32 : i32
    %1 = arith.extui %0 : i1 to i32
    %c0_i32_0 = arith.constant 0 : i32
    %2 = arith.cmpi ne, %1, %c0_i32_0 : i32
    scf.if %2 {
      %c0_6 = arith.constant 0 : index
      %c0_7 = arith.constant 0 : index
      %7 = vector.load %arg2[%c0_6, %c0_7] : memref<16x32xf32, #tpu.memory_space<vmem>>, vector<16x32xf32>
      %c0_8 = arith.constant 0 : index
      %c0_9 = arith.constant 0 : index
      %8 = vector.load %arg3[%c0_8, %c0_9] : memref<32x4xf32, #tpu.memory_space<vmem>>, vector<32x4xf32>
      %cst_10 = arith.constant dense<0.000000e+00> : vector<16x4xf32>
      %9 = tpu.matmul %7, %8, %cst_10 {dimension_numbers = #tpu.dot_dimension_numbers<[1], [0], [0], [1], [0, 0, 1, 1], [], []>} : vector<16x32xf32>, vector<32x4xf32>, vector<16x4xf32> -> vector<16x4xf32>
      %c0_11 = arith.constant 0 : index
      %c0_12 = arith.constant 0 : index
      %10 = vector.load %arg6[%c0_11, %c0_12] : memref<16x4xf32, #tpu.memory_space<vmem>>, vector<16x4xf32>
      tpu.vector_store %arg6[%c0_11, %c0_12], %9 {strides = array<i32>} : memref<16x4xf32, #tpu.memory_space<vmem>>, vector<16x4xf32>,
    } else {
    }
    %c0 = arith.constant 0 : index
    %c0_1 = arith.constant 0 : index
    %3 = vector.load %arg6[%c0, %c0_1] : memref<16x4xf32, #tpu.memory_space<vmem>>, vector<16x4xf32>
    %c0_2 = arith.constant 0 : index
    %c0_3 = arith.constant 0 : index
    %4 = vector.load %arg4[%c0_2, %c0_3] : memref<4x128xf32, #tpu.memory_space<vmem>>, vector<4x128xf32>
    %cst = arith.constant dense<0.000000e+00> : vector<16x128xf32>
    %5 = tpu.matmul %3, %4, %cst {dimension_numbers = #tpu.dot_dimension_numbers<[1], [0], [0], [1], [0, 0, 1, 1], [], []>} : vector<16x4xf32>, vector<4x128xf32>, vector<16x128xf32> -> vector<16x128xf32>
    %c0_4 = arith.constant 0 : index
    %c0_5 = arith.constant 0 : index
    %6 = vector.load %arg5[%c0_4, %c0_5] : memref<16x128xf32, #tpu.memory_space<vmem>>, vector<16x128xf32>
    tpu.vector_store %arg5[%c0_4, %c0_5], %5 {strides = array<i32>} : memref<16x128xf32, #tpu.memory_space<vmem>>, vector<16x128xf32>,
    return
  }
  func.func @transform_0(%arg0: i32, %arg1: i32) -> (i32, i32) {
    %c0_i32 = arith.constant 0 : i32
    %c0_i32_0 = arith.constant 0 : i32
    return %arg0, %c0_i32 : i32, i32
  }
  func.func @transform_1(%arg0: i32, %arg1: i32) -> (i32, i32) {
    %c0_i32 = arith.constant 0 : i32
    %c0_i32_0 = arith.constant 0 : i32
    %c0_i32_1 = arith.constant 0 : i32
    return %c0_i32, %c0_i32_0 : i32, i32
  }
  func.func @transform_2(%arg0: i32, %arg1: i32) -> (i32, i32) {
    %c0_i32 = arith.constant 0 : i32
    %c0_i32_0 = arith.constant 0 : i32
    return %c0_i32, %arg1 : i32, i32
  }
  func.func @transform_3(%arg0: i32, %arg1: i32) -> (i32, i32) {
    %c0_i32 = arith.constant 0 : i32
    return %arg0, %arg1 : i32, i32
  }
}

</mosaic_0001>

<bundles_post_ra>
// kernel: tpu_custom_call.1
= control target key start
LH: loop header
LB: loop body
LE: loop exit
PB: predicated region body
PF: predicated region fallthrough
CT: control target
= control target key end

     0   :  { %vm25_vm0 = vcmask 261120   ;;  %s319_s0 = inlined_call_operand.vmem [shape: f32[16,32], index: 0, kind: input, shape index: {}]   ;;  %s320_s1 = inlined_call_operand.vmem [shape: f32[32,4], index: 1, kind: input, shape index: {}]   ;;  %s321_s2 = inlined_call_operand.vmem [shape: f32[4,128], index: 2, kind: input, shape index: {}]   ;;  %s322_s3 = inlined_call_operand.hbm [shape: f32[16,128], index: 3, kind: output, shape index: {}]  }
   0x1   :  { %v24_v0 = vld [vmem:[%s320_s1 + $0x18] sm:$0xff]  ;;  %v23_v1 = vld [vmem:[%s320_s1 + $0x10] sm:$0xff]  ;;  %v19_v2 = vld [vmem:[%s319_s0] sm:$0xff] }
   0x2   :  { %231 = vmatprep.subr.mxu0 %v24_v0  ;;  %v22_v3 = vld [vmem:[%s320_s1 + $0x8] sm:$0xff]  ;;  %239 = vmatprep.mubr.msk.f32.mxu0 %vm25_vm0, %v19_v2 }
   0x3   :  { %232 = vmatpush3.msra.mxu0 %v24_v0 }
   0x4   :  { %8 = vsyncpa [#allocation4], 0  ;;  %233 = vmatprep.subr.mxu0 %v23_v1  ;;  %v21_v4 = vld [vmem:[%s320_s1] sm:$0xff]  ;;  %v20_v5 = vld [vmem:[%s319_s0 + $0x8] sm:$0xff]  ;;  %vm120_vm1 = vcmask 1043456   ;;  %vm107_vm2 = vcmask 31744  }
   0x5   :  { %234 = vmatpush3.msra.mxu0 %v23_v1  ;;  %v112_v6 = vld [vmem:[%s321_s2] sm:$0xf]  ;;  %s272_s0 = smov [#allocation3]  }
   0x6   :  { %235 = vmatprep.subr.mxu0 %v22_v3  ;;  %242 = vmatprep.subr.msk.mxu1 %vm120_vm1, %v112_v6  ;;  %s206_s1 = sshll.u32 %s272_s0, 4  ;;  %s207_s1 = int_to_ptr.vmem [resolvable:$true] %s206_s1 }
   0x7   :  { %236 = vmatpush3.msra.mxu0 %v22_v3  ;;  %243 = vmatpush3.msk.msra.mxu1 %vm120_vm1, %v112_v6  ;;  %s250_s2 = scalar_lea.vmem %s207_s1, 256  ;;  %p255_p1 = scmp.lt.s32.totalorder %s207_s1, %s207_s1 }
   0x8   :  { %237 = vmatprep.subr.mxu0 %v21_v4  ;;  %p251_p0 = scmp.ne.s32.totalorder %s207_s1, %s250_s2  ;;  %p256_p2 = scmp.lt.s32.totalorder %s250_s2, %s250_s2 }
   0x9   :  { %238 = vmatpush3.msra.mxu0 %v21_v4 }
   0xa   :  { %240 = vmatmul.mubr.msk.f32.vlgmr.msra.gmra.mxu0 %vm25_vm0, %v20_v5  ;;  %p257_p3 = por %p256_p2, %p255_p1 }
   0xc   :  { %p258_p4 = pnand %p257_p3, %p251_p0 }
  0xca   :  { %v241_v7 = vpop.f32.mrf.mxu0 }
  0xcb   :  { %109 = vst.msk [vmem:[#allocation2 + $0x8] sm:$0xff] %vm107_vm2, %v241_v7 }
  0xcc   :  { %v98_v8 = vpop.f32.mrf.mxu0 }
  0xcd   :  { %108 = vst.msk [vmem:[#allocation2] sm:$0xff] %vm107_vm2, %v98_v8 }
  0xd2   :  { %v111_v10 = vld [vmem:[#allocation2 + $0x8] sm:$0xff] }
  0xd4   :  { %v110_v9 = vld [vmem:[#allocation2] sm:$0xff] }
  0xd5   :  { %244 = vmatprep.mubr.msk.f32.mxu1 %vm107_vm2, %v110_v9 }
  0xd6   :  { %245 = vmatmul.mubr.msk.f32.vlgmr.msra.gmra.mxu1 %vm107_vm2, %v111_v10 }
 0x196   :  { %v246_v11 = vpop.f32.mrf.mxu1 }
 0x197   :  { %200 = vst [vmem:[#allocation3 + $0x8] sm:$0xff] %v246_v11 }
 0x198   :  { %v190_v12 = vpop.f32.mrf.mxu1 }
 0x199   :  { %199 = vst [vmem:[#allocation3] sm:$0xff] %v190_v12 }
 0x19a   :  { %261 = shalt.err (!%p258_p4)
}
 0x19b   :  { %s273_s26 = smov 128   ;;  %s274_s27 = smov 8  }
 0x19c   :  { %212 = dma.vmem_to_hbm [thread:$0]  %s207_s1, 256, %s322_s3, [#allocation4], %s273_s26, %s273_s26, %s274_s27  }
 0x19d   :  { %270 = dma.done.wait [#allocation4], 256  }
 0x19e   :  { %271 = vsyncadd [#allocation4], 4294967040 }
 0x19f   :  { %216 = vsyncpa [#allocation4], 1 }

</bundles_post_ra>
